<compile_context>
chip_gen: v7x
topology: tpu7x:2x2x1
jax: 0.10.0
libtpu: 0.0.40
codegen_flags: <defaults>
</compile_context>

<pallas_src>
import functools
import math

import jax
import jax.numpy as jnp
from jax import lax
from jax.experimental import pallas as pl
from jax.experimental.pallas import tpu as pltpu


def _round_up(v, m):
    return ((v + m - 1) // m) * m


# ----------------------------------------------------------------------------
# Ricker filter bank (tiny, elementwise) — plain jnp, fused by XLA.
# Mirrors the torch forward exactly (linspace endpoints inclusive, L2 norm).
# ----------------------------------------------------------------------------
def _ricker_filters(weight, filt_dim, fs):
    t = (jnp.linspace(0.0, float(filt_dim), filt_dim) / fs).astype(jnp.float32)[None, :]
    scale = weight.astype(jnp.float32)                     # (N_filt, 1)
    t2 = t * t
    scale2 = scale * scale
    B = jnp.sqrt(3.0 * scale)
    A = 2.0 / (B * (math.pi ** 0.25))
    kern = A * (1.0 - t2 / scale2) * jnp.exp(-t2 / (2.0 * scale2))
    return kern / jnp.sqrt(jnp.sum(kern * kern, axis=1, keepdims=True))  # (N_filt, Filt_dim)


# ----------------------------------------------------------------------------
# Conv kernel: one (batch-block, output-tile) block per grid step.
#   filt_ref : (N_filt, Filt_dim)      VMEM-resident filter bank (constant index)
#   xa_ref   : (bb, L_TILE)            input tile j            (channel squeezed)
#   xh_ref   : (bb, HALO_W)            halo slab right of tile j
#   o_ref    : (bb, N_filt, L_TILE)    lane-dense output tile
# ----------------------------------------------------------------------------
def wavelet_conv_kernel(filt_ref, xa_ref, xh_ref, o_ref, *, use_mxu):
    filt = filt_ref[...]                                           # (N_filt, Filt_dim)
    xw = jnp.concatenate([xa_ref[...], xh_ref[...]], axis=1)       # (bb, L_TILE + HALO_W)
    filt_dim = filt.shape[1]
    bb, _, l_tile = o_ref.shape

    if use_mxu:
        # Push the contraction over taps to the MXU: filt @ X_windows per batch
        # row, bf16 operands + f32 accumulation (native single-pass MXU path).
        # TODO(synk): for Filt_dim > 128, build windows via k = 128*q + r
        # decomposition (one lane rotate per distinct r) to cap XLU rotates.
        filt_bf = filt.astype(jnp.bfloat16)
        for i in range(bb):
            row = xw[i:i + 1]                                      # (1, L_TILE + HALO_W)
            windows = jnp.concatenate(
                [row[:, k:k + l_tile] for k in range(filt_dim)], axis=0)  # (Filt_dim, L_TILE)
            o_ref[i] = jnp.dot(filt_bf, windows.astype(jnp.bfloat16),
                               preferred_element_type=jnp.float32).astype(o_ref.dtype)
    else:
        # VPU shift-and-accumulate, exact f32:
        #   out[b, f, l] = sum_k filt[f, k] * xw[b, l + k]
        # The (bb, L) window keeps all 8 sublanes busy when bb == 8.
        # TODO(synk): for very large Filt_dim on this path switch to a partially
        # unrolled lax.fori_loop to bound code size / vreg live ranges.
        acc = filt[None, :, 0:1] * xw[:, None, 0:l_tile]
        for k in range(1, filt_dim):
            acc = acc + filt[None, :, k:k + 1] * xw[:, None, k:k + l_tile]
        o_ref[...] = acc.astype(o_ref.dtype)


# ----------------------------------------------------------------------------
# Wrapper
# ----------------------------------------------------------------------------
def wavelet_conv1d(x, weight, filt_dim, fs, *, l_tile=2048, out_dtype=jnp.float32):
    """x: (B, 1, L) float32, weight (scales): (N_filt, 1) float32."""
    n_filt = weight.shape[0]
    b, c, l = x.shape
    assert c == 1, "torch.conv1d with weight (N_filt, 1, Filt_dim) requires in_channels == 1"
    l_out = l - filt_dim + 1
    assert l_out > 0

    filters = _ricker_filters(weight, filt_dim, fs)        # (N_filt, Filt_dim) f32

    # --- tiling over batch and output length ---------------------------------
    halo_w = max(128, _round_up(filt_dim - 1, 128))        # lane-dense halo slab
    bb = next(d for d in (8, 4, 2, 1) if b % d == 0) if b >= 8 else 1

    use_mxu = (n_filt >= 64 and filt_dim >= 64) or filt_dim > 128
    out_bytes = jnp.dtype(out_dtype).itemsize

    l_tile = max(128, min(l_tile, _round_up(l_out, 128)))
    l_tile = _round_up(l_tile, halo_w)                     # halo index_map needs halo_w | l_tile

    VMEM_BUDGET = 48 * 1024 * 1024                         # conservative vs v7x's 64 MiB VMEM

    def vmem_est(lt):
        est = 2 * 4 * bb * (lt + halo_w)                   # x tile + halo, double-buffered
        est += 2 * out_bytes * bb * n_filt * lt            # output tile, double-buffered
        est += 2 * 4 * n_filt * filt_dim                   # VMEM-resident filter bank
        est += 4 * bb * (lt + halo_w)                      # in-kernel halo'd window copy
        est += 4 * bb * n_filt * lt                        # f32 accumulator
        if use_mxu:
            est += 6 * filt_dim * lt                       # f32 + bf16 tap-window matrix
        return est

    while l_tile > halo_w and vmem_est(l_tile) > VMEM_BUDGET:
        l_tile = max(halo_w, _round_up(l_tile // 2, halo_w))

    n_tiles = pl.cdiv(l_out, l_tile)
    # Keep >= 2 parallel grid steps when possible (two TensorCores on v7x).
    if (b // bb) * n_tiles < 2:
        cand = _round_up(pl.cdiv(l_out, 2), halo_w)
        if cand < l_tile:
            l_tile = cand
            n_tiles = pl.cdiv(l_out, l_tile)

    l_out_pad = n_tiles * l_tile
    l_pad = l_out_pad + halo_w                             # one halo slab past the last tile
    x_pad = jnp.pad(x.astype(jnp.float32), ((0, 0), (0, 0), (0, l_pad - l)))

    kernel = functools.partial(wavelet_conv_kernel, use_mxu=use_mxu)
    halo_stride = l_tile // halo_w

    out_pad = pl.pallas_call(
        kernel,
        out_shape=jax.ShapeDtypeStruct((b, n_filt, l_out_pad), out_dtype),
        grid=(b // bb, n_tiles),
        in_specs=[
            # filter bank: constant block index -> stays VMEM-resident
            pl.BlockSpec((n_filt, filt_dim), lambda i, j: (0, 0)),
            # current input tile (channel dim squeezed out of the kernel view)
            pl.BlockSpec((bb, None, l_tile), lambda i, j: (i, 0, j)),
            # small halo slab to the right of tile j (Filt_dim-1 elements needed)
            pl.BlockSpec((bb, None, halo_w),
                         lambda i, j: (i, 0, (j + 1) * halo_stride)),
        ],
        out_specs=pl.BlockSpec((bb, n_filt, l_tile), lambda i, j: (i, 0, j)),
        compiler_params=pltpu.CompilerParams(
            dimension_semantics=("parallel", "parallel"),
            vmem_limit_bytes=int(min(64 * 1024 * 1024,
                                     max(16 * 1024 * 1024, 2 * vmem_est(l_tile)))),
        ),
        cost_estimate=pl.CostEstimate(
            flops=2 * b * n_filt * filt_dim * l_out,
            transcendentals=0,
            bytes_accessed=(4 * b * n_tiles * (l_tile + halo_w)   # x reads incl. halo re-read
                            + 4 * n_filt * filt_dim
                            + out_bytes * b * n_filt * l_out_pad),
        ),
    )(filters, x_pad, x_pad)

    return out_pad[:, :, :l_out], filters


# Pure-JAX reference for verification (same math, XLA conv).
def wavelet_conv1d_ref(x, weight, filt_dim, fs):
    n_filt = weight.shape[0]
    filters = _ricker_filters(weight, filt_dim, fs)
    w = filters.reshape(n_filt, 1, filt_dim)
    return lax.conv_general_dilated(
        x, w, window_strides=(1,), padding="VALID",
        dimension_numbers=("NCH", "OIH", "NCH"))


if __name__ == "__main__":
    def _run_case(name, batch, length, n_filt, filt_dim, fs, tol):
        # Deterministic parameter init mirroring __init__:
        #   weight = torch.logspace(0, 1.4, N_filt).reshape(N_filt, 1)
        weight = (10.0 ** jnp.linspace(0.0, 1.4, n_filt)).reshape(n_filt, 1).astype(jnp.float32)
        key = jax.random.PRNGKey(0)
        x = jax.random.normal(key, (batch, 1, length), dtype=jnp.float32)

        out, _ = wavelet_conv1d(x, weight, filt_dim, fs)
        out = jax.block_until_ready(out)
        ref = wavelet_conv1d_ref(x, weight, filt_dim, fs)

        assert out.shape == (batch, n_filt, length - filt_dim + 1), (name, out.shape)
        err = float(jnp.max(jnp.abs(out - ref)))
        assert jnp.allclose(out, ref, rtol=tol, atol=tol), (name, err)

    # 1) module-sized demo: exact-f32 VPU path, bb=1, grid parallel over batch.
    _run_case("vpu_small", batch=2, length=64, n_filt=8, filt_dim=16, fs=16.0, tol=1e-5)
    # 2) MXU path (N_filt=Filt_dim=64): bf16 operands on the MXU, f32 accumulation.
    _run_case("mxu", batch=2, length=256, n_filt=64, filt_dim=64, fs=16.0, tol=5e-2)
    # 3) batch-blocked VPU path (8 batch rows per grid step, full sublane occupancy).
    _run_case("vpu_batched", batch=8, length=64, n_filt=8, filt_dim=16, fs=16.0, tol=1e-5)

    print("KERNEL_OK")
</pallas_src>

<mosaic_0001>
module attributes {stable_mosaic.version = 11 : i64} {
  func.func @wavelet_conv_kernel(%arg0: i32, %arg1: i32, %arg2: memref<8x16xf32, #tpu.memory_space<vmem>>, %arg3: memref<1x1x128xf32, #tpu.memory_space<vmem>>, %arg4: memref<1x1x128xf32, #tpu.memory_space<vmem>>, %arg5: memref<1x8x128xf32, #tpu.memory_space<vmem>>) attributes {dimension_semantics = [#tpu.dimension_semantics<parallel>, #tpu.dimension_semantics<parallel>], iteration_bounds = array<i64: 2, 1>, scalar_prefetch = 0 : i64, scratch_operands = 0 : i64, tpu.core_type = #tpu.core_type<tc>, window_params = [{pipeline_mode = #tpu.pipeline_mode<synchronous>, transform_indices = @transform_0, window_bounds = array<i64: 8, 16>}, {transform_indices = @transform_1, window_bounds = array<i64: 1, 1, 128>}, {transform_indices = @transform_2, window_bounds = array<i64: 1, 1, 128>}, {transform_indices = @transform_3, window_bounds = array<i64: 1, 8, 128>}]} {
    %c0 = arith.constant 0 : index
    %c0_0 = arith.constant 0 : index
    %0 = vector.load %arg2[%c0, %c0_0] : memref<8x16xf32, #tpu.memory_space<vmem>>, vector<8x16xf32>
    %c0_1 = arith.constant 0 : index
    %c0_2 = arith.constant 0 : index
    %c0_3 = arith.constant 0 : index
    %1 = vector.load %arg3[%c0_1, %c0_2, %c0_3] : memref<1x1x128xf32, #tpu.memory_space<vmem>>, vector<1x1x128xf32>
    %2 = vector.shape_cast %1 : vector<1x1x128xf32> to vector<1x128xf32>
    %c0_4 = arith.constant 0 : index
    %c0_5 = arith.constant 0 : index
    %c0_6 = arith.constant 0 : index
    %3 = vector.load %arg4[%c0_4, %c0_5, %c0_6] : memref<1x1x128xf32, #tpu.memory_space<vmem>>, vector<1x1x128xf32>
    %4 = vector.shape_cast %3 : vector<1x1x128xf32> to vector<1x128xf32>
    %5 = tpu.concatenate %2, %4 in 1 : vector<1x128xf32>, vector<1x128xf32> -> vector<1x256xf32>
    %6 = vector.extract_strided_slice %0 {offsets = [0, 0], sizes = [8, 1], strides = [1, 1]} : vector<8x16xf32> to vector<8x1xf32>
    %7 = vector.shape_cast %6 : vector<8x1xf32> to vector<1x8x1xf32>
    %8 = vector.extract_strided_slice %5 {offsets = [0, 0], sizes = [1, 128], strides = [1, 1]} : vector<1x256xf32> to vector<1x128xf32>
    %9 = vector.shape_cast %8 : vector<1x128xf32> to vector<1x1x128xf32>
    %10 = vector.broadcast %7 : vector<1x8x1xf32> to vector<1x8x128xf32>
    %11 = vector.broadcast %9 : vector<1x1x128xf32> to vector<1x8x128xf32>
    %12 = arith.mulf %10, %11 : vector<1x8x128xf32>
    %13 = vector.extract_strided_slice %0 {offsets = [0, 1], sizes = [8, 1], strides = [1, 1]} : vector<8x16xf32> to vector<8x1xf32>
    %14 = vector.shape_cast %13 : vector<8x1xf32> to vector<1x8x1xf32>
    %15 = vector.extract_strided_slice %5 {offsets = [0, 1], sizes = [1, 128], strides = [1, 1]} : vector<1x256xf32> to vector<1x128xf32>
    %16 = vector.shape_cast %15 : vector<1x128xf32> to vector<1x1x128xf32>
    %17 = vector.broadcast %14 : vector<1x8x1xf32> to vector<1x8x128xf32>
    %18 = vector.broadcast %16 : vector<1x1x128xf32> to vector<1x8x128xf32>
    %19 = arith.mulf %17, %18 : vector<1x8x128xf32>
    %20 = arith.addf %12, %19 : vector<1x8x128xf32>
    %21 = vector.extract_strided_slice %0 {offsets = [0, 2], sizes = [8, 1], strides = [1, 1]} : vector<8x16xf32> to vector<8x1xf32>
    %22 = vector.shape_cast %21 : vector<8x1xf32> to vector<1x8x1xf32>
    %23 = vector.extract_strided_slice %5 {offsets = [0, 2], sizes = [1, 128], strides = [1, 1]} : vector<1x256xf32> to vector<1x128xf32>
    %24 = vector.shape_cast %23 : vector<1x128xf32> to vector<1x1x128xf32>
    %25 = vector.broadcast %22 : vector<1x8x1xf32> to vector<1x8x128xf32>
    %26 = vector.broadcast %24 : vector<1x1x128xf32> to vector<1x8x128xf32>
    %27 = arith.mulf %25, %26 : vector<1x8x128xf32>
    %28 = arith.addf %20, %27 : vector<1x8x128xf32>
    %29 = vector.extract_strided_slice %0 {offsets = [0, 3], sizes = [8, 1], strides = [1, 1]} : vector<8x16xf32> to vector<8x1xf32>
    %30 = vector.shape_cast %29 : vector<8x1xf32> to vector<1x8x1xf32>
    %31 = vector.extract_strided_slice %5 {offsets = [0, 3], sizes = [1, 128], strides = [1, 1]} : vector<1x256xf32> to vector<1x128xf32>
    %32 = vector.shape_cast %31 : vector<1x128xf32> to vector<1x1x128xf32>
    %33 = vector.broadcast %30 : vector<1x8x1xf32> to vector<1x8x128xf32>
    %34 = vector.broadcast %32 : vector<1x1x128xf32> to vector<1x8x128xf32>
    %35 = arith.mulf %33, %34 : vector<1x8x128xf32>
    %36 = arith.addf %28, %35 : vector<1x8x128xf32>
    %37 = vector.extract_strided_slice %0 {offsets = [0, 4], sizes = [8, 1], strides = [1, 1]} : vector<8x16xf32> to vector<8x1xf32>
    %38 = vector.shape_cast %37 : vector<8x1xf32> to vector<1x8x1xf32>
    %39 = vector.extract_strided_slice %5 {offsets = [0, 4], sizes = [1, 128], strides = [1, 1]} : vector<1x256xf32> to vector<1x128xf32>
    %40 = vector.shape_cast %39 : vector<1x128xf32> to vector<1x1x128xf32>
    %41 = vector.broadcast %38 : vector<1x8x1xf32> to vector<1x8x128xf32>
    %42 = vector.broadcast %40 : vector<1x1x128xf32> to vector<1x8x128xf32>
    %43 = arith.mulf %41, %42 : vector<1x8x128xf32>
    %44 = arith.addf %36, %43 : vector<1x8x128xf32>
    %45 = vector.extract_strided_slice %0 {offsets = [0, 5], sizes = [8, 1], strides = [1, 1]} : vector<8x16xf32> to vector<8x1xf32>
    %46 = vector.shape_cast %45 : vector<8x1xf32> to vector<1x8x1xf32>
    %47 = vector.extract_strided_slice %5 {offsets = [0, 5], sizes = [1, 128], strides = [1, 1]} : vector<1x256xf32> to vector<1x128xf32>
    %48 = vector.shape_cast %47 : vector<1x128xf32> to vector<1x1x128xf32>
    %49 = vector.broadcast %46 : vector<1x8x1xf32> to vector<1x8x128xf32>
    %50 = vector.broadcast %48 : vector<1x1x128xf32> to vector<1x8x128xf32>
    %51 = arith.mulf %49, %50 : vector<1x8x128xf32>
    %52 = arith.addf %44, %51 : vector<1x8x128xf32>
    %53 = vector.extract_strided_slice %0 {offsets = [0, 6], sizes = [8, 1], strides = [1, 1]} : vector<8x16xf32> to vector<8x1xf32>
    %54 = vector.shape_cast %53 : vector<8x1xf32> to vector<1x8x1xf32>
    %55 = vector.extract_strided_slice %5 {offsets = [0, 6], sizes = [1, 128], strides = [1, 1]} : vector<1x256xf32> to vector<1x128xf32>
    %56 = vector.shape_cast %55 : vector<1x128xf32> to vector<1x1x128xf32>
    %57 = vector.broadcast %54 : vector<1x8x1xf32> to vector<1x8x128xf32>
    %58 = vector.broadcast %56 : vector<1x1x128xf32> to vector<1x8x128xf32>
    %59 = arith.mulf %57, %58 : vector<1x8x128xf32>
    %60 = arith.addf %52, %59 : vector<1x8x128xf32>
    %61 = vector.extract_strided_slice %0 {offsets = [0, 7], sizes = [8, 1], strides = [1, 1]} : vector<8x16xf32> to vector<8x1xf32>
    %62 = vector.shape_cast %61 : vector<8x1xf32> to vector<1x8x1xf32>
    %63 = vector.extract_strided_slice %5 {offsets = [0, 7], sizes = [1, 128], strides = [1, 1]} : vector<1x256xf32> to vector<1x128xf32>
    %64 = vector.shape_cast %63 : vector<1x128xf32> to vector<1x1x128xf32>
    %65 = vector.broadcast %62 : vector<1x8x1xf32> to vector<1x8x128xf32>
    %66 = vector.broadcast %64 : vector<1x1x128xf32> to vector<1x8x128xf32>
    %67 = arith.mulf %65, %66 : vector<1x8x128xf32>
    %68 = arith.addf %60, %67 : vector<1x8x128xf32>
    %69 = vector.extract_strided_slice %0 {offsets = [0, 8], sizes = [8, 1], strides = [1, 1]} : vector<8x16xf32> to vector<8x1xf32>
    %70 = vector.shape_cast %69 : vector<8x1xf32> to vector<1x8x1xf32>
    %71 = vector.extract_strided_slice %5 {offsets = [0, 8], sizes = [1, 128], strides = [1, 1]} : vector<1x256xf32> to vector<1x128xf32>
    %72 = vector.shape_cast %71 : vector<1x128xf32> to vector<1x1x128xf32>
    %73 = vector.broadcast %70 : vector<1x8x1xf32> to vector<1x8x128xf32>
    %74 = vector.broadcast %72 : vector<1x1x128xf32> to vector<1x8x128xf32>
    %75 = arith.mulf %73, %74 : vector<1x8x128xf32>
    %76 = arith.addf %68, %75 : vector<1x8x128xf32>
    %77 = vector.extract_strided_slice %0 {offsets = [0, 9], sizes = [8, 1], strides = [1, 1]} : vector<8x16xf32> to vector<8x1xf32>
    %78 = vector.shape_cast %77 : vector<8x1xf32> to vector<1x8x1xf32>
    %79 = vector.extract_strided_slice %5 {offsets = [0, 9], sizes = [1, 128], strides = [1, 1]} : vector<1x256xf32> to vector<1x128xf32>
    %80 = vector.shape_cast %79 : vector<1x128xf32> to vector<1x1x128xf32>
    %81 = vector.broadcast %78 : vector<1x8x1xf32> to vector<1x8x128xf32>
    %82 = vector.broadcast %80 : vector<1x1x128xf32> to vector<1x8x128xf32>
    %83 = arith.mulf %81, %82 : vector<1x8x128xf32>
    %84 = arith.addf %76, %83 : vector<1x8x128xf32>
    %85 = vector.extract_strided_slice %0 {offsets = [0, 10], sizes = [8, 1], strides = [1, 1]} : vector<8x16xf32> to vector<8x1xf32>
    %86 = vector.shape_cast %85 : vector<8x1xf32> to vector<1x8x1xf32>
    %87 = vector.extract_strided_slice %5 {offsets = [0, 10], sizes = [1, 128], strides = [1, 1]} : vector<1x256xf32> to vector<1x128xf32>
    %88 = vector.shape_cast %87 : vector<1x128xf32> to vector<1x1x128xf32>
    %89 = vector.broadcast %86 : vector<1x8x1xf32> to vector<1x8x128xf32>
    %90 = vector.broadcast %88 : vector<1x1x128xf32> to vector<1x8x128xf32>
    %91 = arith.mulf %89, %90 : vector<1x8x128xf32>
    %92 = arith.addf %84, %91 : vector<1x8x128xf32>
    %93 = vector.extract_strided_slice %0 {offsets = [0, 11], sizes = [8, 1], strides = [1, 1]} : vector<8x16xf32> to vector<8x1xf32>
    %94 = vector.shape_cast %93 : vector<8x1xf32> to vector<1x8x1xf32>
    %95 = vector.extract_strided_slice %5 {offsets = [0, 11], sizes = [1, 128], strides = [1, 1]} : vector<1x256xf32> to vector<1x128xf32>
    %96 = vector.shape_cast %95 : vector<1x128xf32> to vector<1x1x128xf32>
    %97 = vector.broadcast %94 : vector<1x8x1xf32> to vector<1x8x128xf32>
    %98 = vector.broadcast %96 : vector<1x1x128xf32> to vector<1x8x128xf32>
    %99 = arith.mulf %97, %98 : vector<1x8x128xf32>
    %100 = arith.addf %92, %99 : vector<1x8x128xf32>
    %101 = vector.extract_strided_slice %0 {offsets = [0, 12], sizes = [8, 1], strides = [1, 1]} : vector<8x16xf32> to vector<8x1xf32>
    %102 = vector.shape_cast %101 : vector<8x1xf32> to vector<1x8x1xf32>
    %103 = vector.extract_strided_slice %5 {offsets = [0, 12], sizes = [1, 128], strides = [1, 1]} : vector<1x256xf32> to vector<1x128xf32>
    %104 = vector.shape_cast %103 : vector<1x128xf32> to vector<1x1x128xf32>
    %105 = vector.broadcast %102 : vector<1x8x1xf32> to vector<1x8x128xf32>
    %106 = vector.broadcast %104 : vector<1x1x128xf32> to vector<1x8x128xf32>
    %107 = arith.mulf %105, %106 : vector<1x8x128xf32>
    %108 = arith.addf %100, %107 : vector<1x8x128xf32>
    %109 = vector.extract_strided_slice %0 {offsets = [0, 13], sizes = [8, 1], strides = [1, 1]} : vector<8x16xf32> to vector<8x1xf32>
    %110 = vector.shape_cast %109 : vector<8x1xf32> to vector<1x8x1xf32>
    %111 = vector.extract_strided_slice %5 {offsets = [0, 13], sizes = [1, 128], strides = [1, 1]} : vector<1x256xf32> to vector<1x128xf32>
    %112 = vector.shape_cast %111 : vector<1x128xf32> to vector<1x1x128xf32>
    %113 = vector.broadcast %110 : vector<1x8x1xf32> to vector<1x8x128xf32>
    %114 = vector.broadcast %112 : vector<1x1x128xf32> to vector<1x8x128xf32>
    %115 = arith.mulf %113, %114 : vector<1x8x128xf32>
    %116 = arith.addf %108, %115 : vector<1x8x128xf32>
    %117 = vector.extract_strided_slice %0 {offsets = [0, 14], sizes = [8, 1], strides = [1, 1]} : vector<8x16xf32> to vector<8x1xf32>
    %118 = vector.shape_cast %117 : vector<8x1xf32> to vector<1x8x1xf32>
    %119 = vector.extract_strided_slice %5 {offsets = [0, 14], sizes = [1, 128], strides = [1, 1]} : vector<1x256xf32> to vector<1x128xf32>
    %120 = vector.shape_cast %119 : vector<1x128xf32> to vector<1x1x128xf32>
    %121 = vector.broadcast %118 : vector<1x8x1xf32> to vector<1x8x128xf32>
    %122 = vector.broadcast %120 : vector<1x1x128xf32> to vector<1x8x128xf32>
    %123 = arith.mulf %121, %122 : vector<1x8x128xf32>
    %124 = arith.addf %116, %123 : vector<1x8x128xf32>
    %125 = vector.extract_strided_slice %0 {offsets = [0, 15], sizes = [8, 1], strides = [1, 1]} : vector<8x16xf32> to vector<8x1xf32>
    %126 = vector.shape_cast %125 : vector<8x1xf32> to vector<1x8x1xf32>
    %127 = vector.extract_strided_slice %5 {offsets = [0, 15], sizes = [1, 128], strides = [1, 1]} : vector<1x256xf32> to vector<1x128xf32>
    %128 = vector.shape_cast %127 : vector<1x128xf32> to vector<1x1x128xf32>
    %129 = vector.broadcast %126 : vector<1x8x1xf32> to vector<1x8x128xf32>
    %130 = vector.broadcast %128 : vector<1x1x128xf32> to vector<1x8x128xf32>
    %131 = arith.mulf %129, %130 : vector<1x8x128xf32>
    %132 = arith.addf %124, %131 : vector<1x8x128xf32>
    %c0_7 = arith.constant 0 : index
    %c0_8 = arith.constant 0 : index
    %c0_9 = arith.constant 0 : index
    %133 = vector.load %arg5[%c0_7, %c0_8, %c0_9] : memref<1x8x128xf32, #tpu.memory_space<vmem>>, vector<1x8x128xf32>
    tpu.vector_store %arg5[%c0_7, %c0_8, %c0_9], %132 {strides = array<i32>} : memref<1x8x128xf32, #tpu.memory_space<vmem>>, vector<1x8x128xf32>,
    return
  }
  func.func @transform_0(%arg0: i32, %arg1: i32) -> (i32, i32) {
    %c0_i32 = arith.constant 0 : i32
    %c0_i32_0 = arith.constant 0 : i32
    %c0_i32_1 = arith.constant 0 : i32
    return %c0_i32, %c0_i32_0 : i32, i32
  }
  func.func @transform_1(%arg0: i32, %arg1: i32) -> (i32, i32, i32) {
    %c0_i32 = arith.constant 0 : i32
    %c0_i32_0 = arith.constant 0 : i32
    return %arg0, %c0_i32, %arg1 : i32, i32, i32
  }
  func.func @transform_2(%arg0: i32, %arg1: i32) -> (i32, i32, i32) {
    %c1_i32 = arith.constant 1 : i32
    %0 = arith.addi %arg1, %c1_i32 : i32
    %c1_i32_0 = arith.constant 1 : i32
    %1 = arith.muli %0, %c1_i32_0 : i32
    %c0_i32 = arith.constant 0 : i32
    %c0_i32_1 = arith.constant 0 : i32
    return %arg0, %c0_i32, %1 : i32, i32, i32
  }
  func.func @transform_3(%arg0: i32, %arg1: i32) -> (i32, i32, i32) {
    %c0_i32 = arith.constant 0 : i32
    %c0_i32_0 = arith.constant 0 : i32
    return %arg0, %c0_i32, %arg1 : i32, i32, i32
  }
}

</mosaic_0001>

<bundles_post_ra>
// kernel: tpu_custom_call.1
= control target key start
LH: loop header
LB: loop body
LE: loop exit
PB: predicated region body
PF: predicated region fallthrough
CT: control target
= control target key end

     0   :  { %8 = vsyncpa [#allocation3], 0  ;;  %s1224_s0 = inlined_call_operand.hbm [shape: f32[8,16], index: 0, kind: input, shape index: {}]   ;;  %s1225_s1 = inlined_call_operand.hbm [shape: f32[2,1,256], index: 1, kind: input, shape index: {}]   ;;  %s1226_s2 = inlined_call_operand.vmem [shape: f32[2,1,256], index: 2, kind: input, shape index: {}]   ;;  %s1227_s3 = inlined_call_operand.hbm [shape: f32[2,8,128], index: 3, kind: output, shape index: {}]  }
   0x1   :  { %9 = vsyncpa [#allocation6], 0 }
   0x2   :  { %11 = vsyncpa [#allocation6 + $0x1], 0 }
   0x3   :  { %12 = vsyncpa [#allocation4], 0 }
   0x4   :  { %14 = vsyncpa [#allocation4 + $0x1], 0  ;;  %s965_s12 = smov 0   ;;  %s967_s13 = smov 0  }
   0x5   :  { %s969_s14 = smov 0   ;;  %s971_s15 = smov 0  }
   0x6   :  { %s973_s16 = smov 0   ;;  %s975_s17 = smov 0  }
   0x7 LB: > { %s627_s18 = sadd.s32 4294967295, %s909_s17   ;;  %s628_s19 = sadd.s32 4294967294, %s909_s17   ;;  %s909_s17 = sphi %s975_s17, %s20_s17   ;;  %s905_s16 = sphi %s973_s16, %s1252_s16   ;;  %s901_s15 = sphi %s971_s15, %s1251_s15   ;;  %s897_s14 = sphi %s969_s14, %s1250_s14   ;;  %s893_s13 = sphi %s967_s13, %s1249_s13   ;;  %s889_s12 = sphi %s965_s12, %s1248_s12  }
   0x8   : > { %p75_p0 = scmp.ne.s32.totalorder %s893_s13, %s889_s12  ;;  %p999_p1 = scmp.eq.s32.totalorder %s627_s18, 0 }
   0x9   : > { %p1003_p2 = scmp.eq.s32.totalorder %s627_s18, 1  ;;  %p137_p3 = scmp.eq.s32.totalorder %s628_s19, 1 }
   0xa   : > { %s1232_s20 = scalar_select %p999_p1, 1, 0 }
   0xb   : > { %s1233_s21 = scalar_select %p1003_p2, 1, 0 }
   0xc   : > { %p1009_p4 = por %p999_p1, %p75_p0  ;;  %p629_p5 = scmp.ge.s32.totalorder %s909_s17, 1 }
   0xd   : > { %p1014_p6 = por %p137_p3, %p75_p0  ;;  %p144_p7 = scmp.lt.s32.totalorder %s909_s17, 3 }
   0xe   : > { %s1234_s22 = scalar_select %p1009_p4, 1, 0 }
   0xf   : > { %s1235_s23 = scalar_select %p1014_p6, 1, 0 }
  0x10   : > { %p1019_p8 = pnand %p629_p5, %p144_p7  ;;  %s911_s25 = smov [#allocation2]  }
  0x11   : > { %s157_s26 = sshll.u32 %s911_s25, 4  ;;  %s32_s28 = sadd.s32 1, %s905_s16  ;;  %s158_s26 = int_to_ptr.vmem [resolvable:$true] %s157_s26 }
  0x12   : > { %s1236_s24 = scalar_select %p1019_p8, 1, 0 }
  0x13   : > { %p653_p10 = pneg %p1019_p8  ;;  %s62_s29 = sadd.s32 1, %s897_s14 }
  0x14   : > { %p1034_p12 = scmp.ge.s32.totalorder %s32_s28, 2  ;;  %s765_s6 = scalar_lea.hbm %s1224_s0, 128 }
  0x15   : > { %p1028_p11 = pnand %p653_p10, %p999_p1  ;;  %p766_p13 = scmp.ne.s32.totalorder %s1224_s0, %s765_s6 }
  0x16   : > { %s1238_s30 = scalar_select %p1034_p12, 1, 0 }
  0x17   : > { %p767_p0 = pneg %p1028_p11  ;;  %p772_p7 = scmp.lt.u32.totalorder %s765_s6, %s1224_s0 }
  0x19   : > { %p768_p3 = pnand %p767_p0, %p766_p13 }
  0x1b   : > { %p769_p5 = pneg %p768_p3 }
  0x1d   : > { %p774_p10 = pnand %p772_p7, %p769_p5 }
  0x1f   : > { %777 = shalt.err (!%p774_p10)
}
  0x20   : > { %s778_s11 = scalar_lea.vmem %s158_s26, 128  ;;  %p786_p1 = scmp.lt.s32.totalorder %s158_s26, %s158_s26 }
  0x21   : > { %p779_p9 = scmp.ne.s32.totalorder %s158_s26, %s778_s11  ;;  %p787_p8 = scmp.lt.s32.totalorder %s778_s11, %s778_s11 }
  0x23   : > { %p781_p6 = pnand %p779_p9, %p767_p0  ;;  %p788_p2 = por %p787_p8, %p786_p1 }
  0x25   : > { %p782_p4 = pneg %p781_p6 }
  0x27   : > { %p789_p12 = pnand %p788_p2, %p782_p4 }
  0x29   : > { %792 = shalt.err (!%p789_p12)
}
  0x2a   : > { %656 = dma.hbm_to_vmem [thread:$0]  (!%p1028_p11), %s1224_s0, 128, %s158_s26, [#allocation3]  }
  0x2b   : > { %p1239_p1 = scmp.ne.s32.totalorder %s1238_s30, 0  ;;  %p69_p2 = scmp.ne.s32.totalorder %s897_s14, %s893_s13 }
  0x2c   : > { %p70_p4 = scmp.eq.s32.totalorder %s909_s17, 0  ;;  %p666_p6 = scmp.lt.s32.totalorder %s909_s17, 2 }
  0x2d   : > { %s1254_s28 = smov (%p1239_p1, %s32_s28), 0  ;;  %p1240_p12 = scmp.ne.s32.totalorder %s1233_s21, 0 }
  0x2e   : > { %s57_s25 = ssub.s32 %s905_s16, %s1254_s28  ;;  %p71_p9 = por %p70_p4, %p69_p2 }
  0x2f   : > { %p60_p8 = scmp.eq.s32.totalorder %s57_s25, 0  ;;  %p1066_p13 = por %p1240_p12, %p69_p2 }
  0x30   : > { %s168_s4 = sand.u32 1, %s897_s14   ;;  %s644_s26 = sshll.u32 %s905_s16, 5 }
  0x31   : > { %s1074_s5 = scalar_select %p60_p8, %s897_s14, %s62_s29  }
  0x32   : > { %s171_s30 = scalar_lea.vmem [#allocation5], %s168_s4  ;;  %s1080_s9 = scalar_lea.hbm %s1225_s1, %s644_s26 }
  0x33   : > { %s180_s6 = sshll.u32 %s171_s30, 4  ;;  %p1084_p11 = pnand %p666_p6, %p71_p9  ;;  %s1082_s6 = int_to_ptr.vmem [resolvable:$true] %s180_s6 }
  0x34   : > { %s169_s29 = scalar_lea.sflag [#allocation6], %s168_s4  ;;  %s793_s10 = scalar_lea.hbm %s1080_s9, 16 }
  0x35   : > { %p794_p0 = scmp.ne.s32.totalorder %s1080_s9, %s793_s10  ;;  %p795_p3 = pneg %p1084_p11 }
  0x36   : > { %s798_s19 = scalar_lea.hbm %s1225_s1, 64  ;;  %p799_p10 = scmp.lt.u32.totalorder %s1080_s9, %s1225_s1 }
  0x37   : > { %p796_p5 = pnand %p795_p3, %p794_p0  ;;  %p800_p1 = scmp.lt.u32.totalorder %s798_s19, %s793_s10 }
  0x38   : > { %p802_p4 = scmp.lt.u32.totalorder %s793_s10, %s1080_s9 }
  0x39   : > { %p797_p7 = pneg %p796_p5  ;;  %p801_p2 = por %p800_p1, %p799_p10 }
  0x3b   : > { %p803_p6 = por %p802_p4, %p801_p2 }
  0x3d   : > { %p804_p8 = pnand %p803_p6, %p797_p7 }
  0x3f   : > { %807 = shalt.err (!%p804_p8)
}
  0x40   : > { %s808_s4 = scalar_lea.vmem %s1082_s6, 16  ;;  %s912_s30 = smov [#allocation5]  }
  0x41   : > { %p809_p9 = scmp.ne.s32.totalorder %s1082_s6, %s808_s4  ;;  %s813_s7 = sshll.u32 %s912_s30, 4  ;;  %s814_s7 = int_to_ptr.vmem [resolvable:$false] %s813_s7 }
  0x42   : > { %s815_s8 = scalar_lea.vmem %s814_s7, 32  ;;  %p816_p5 = scmp.lt.s32.totalorder %s1082_s6, %s814_s7 }
  0x43   : > { %p811_p12 = pnand %p809_p9, %p795_p3  ;;  %p817_p10 = scmp.lt.s32.totalorder %s815_s8, %s808_s4 }
  0x45   : > { %p812_p0 = pneg %p811_p12  ;;  %p818_p1 = por %p817_p10, %p816_p5 }
  0x47   : > { %p819_p2 = pnand %p818_p1, %p812_p0 }
  0x49   : > { %822 = shalt.err (!%p819_p2)
}
  0x4a   : > { %660 = dma.hbm_to_vmem [thread:$0]  (!%p1084_p11), %s1080_s9, 16, %s1082_s6, %s169_s29  }
  0x4b   : > { %p1243_p7 = scmp.ne.s32.totalorder %s1236_s24, 0 }
  0x4c   : > { %p1244_p3 = scmp.ne.s32.totalorder (!%p1243_p7), %s1232_s20, 0 }
  0x4d   : > { %201 = sbr.rel (%p1243_p7) target bundleno = 409 (0x199), region = 32 }
  0x54   : > { %876 = dma.done.wait (%p1244_p3), [#allocation3], 128  }
  0x55   : > { %878 = vsyncadd (%p1244_p3), [#allocation3], 4294967168  ;;  %s1120_s10 = sand.u32 1, %s893_s13   ;;  %p1245_p4 = scmp.ne.s32.totalorder %s1234_s22, 0 }
  0x56   : > { %s208_s11 = scalar_lea.sflag [#allocation6], %s1120_s10  ;;  %s210_s21 = scalar_lea.vmem [#allocation5], %s1120_s10 }
  0x57   : > { %880 = dma.done.wait (%p1245_p4), %s208_s11, 16  }
  0x58   : > { %882 = vsyncadd (%p1245_p4), %s208_s11, 4294967280  ;;  %v913_v0 = vmov 1   ;;  %v914_v1 = vmov 3   ;;  %v249_v2 = vld [vmem:[#allocation2] sm:$0xff]  ;;  %v915_v3 = vmov 2   ;;  %v916_v4 = vmov 4  }
  0x59   : > { %749 = vset.pattern.permute.xlu0 %v913_v0  ;;  %751 = vset.pattern.permute.xlu1 %v914_v1  ;;  %v917_v5 = vmov 5   ;;  %v918_v6 = vmov 6   ;;  %v919_v7 = vmov 7   ;;  %v920_v8 = vmov 9   ;;  %p241_p11 = scmp.lt.s32.totalorder %s901_s15, 1  ;;  %s929_s18 = smov 127  }
  0x5a   : > { %263 = vperm.xlu0 %749, %v249_v2   ;;  %299 = vperm.xlu1 %751, %v249_v2   ;;  %v921_v9 = vmov 8   ;;  %v922_v10 = vmov 12   ;;  %v923_v11 = vmov 10   ;;  %v924_v12 = vmov 15   ;;  %v1135_v17 = vld [vmem:[%s210_s21] ss:$0 sm:$0xff] }
  0x5b   : > { %v925_v13 = vmov 11   ;;  %v926_v14 = vmov 13   ;;  %v927_v15 = vmov 14   ;;  %v928_v16 = vmov 0   ;;  %s242_s20 = scalar_select %p241_p11, %s901_s15, 1 }
  0x5c   : > { %s930_s19 = smov 126   ;;  %s931_s25 = smov 125   ;;  %vm278_vm0 = vcmask 1039360   ;;  %vm294_vm1 = vcmask 1031168   ;;  %vm310_vm2 = vcmask 1022976   ;;  %vm326_vm3 = vcmask 1014784  }
  0x5d   : > { %s637_s22 = sshll.u32 %s242_s20, 1  ;;  %s932_s26 = smov 124   ;;  %vm342_vm4 = vcmask 1006592   ;;  %vm358_vm5 = vcmask 998400   ;;  %vm374_vm6 = vcmask 990208   ;;  %vm390_vm7 = vcmask 982016  }
  0x5e   : > { %750 = vset.pattern.permute.xlu0 %v915_v3  ;;  %752 = vset.pattern.permute.xlu1 %v916_v4  ;;  %s246_s24 = sadd.s32 1, %s637_s22  ;;  %s933_s4 = smov 123   ;;  %vm406_vm8 = vcmask 973824   ;;  %vm422_vm9 = vcmask 965632   ;;  %vm438_vm10 = vcmask 957440   ;;  %vm454_vm11 = vcmask 949248  }
  0x5f   : > { %283 = vperm.xlu0 %750, %v249_v2   ;;  %315 = vperm.xlu1 %752, %v249_v2   ;;  %s247_s29 = scalar_lea.vmem %s1226_s2, %s246_s24  ;;  %s934_s30 = smov 122   ;;  %vm470_vm12 = vcmask 941056   ;;  %vm486_vm13 = vcmask 932864   ;;  %vm502_vm14 = vcmask 924672  }
  0x60   : > { %v1137_v18 = vld [vmem:[%s247_s29] ss:$0 sm:$0xff]  ;;  %s935_s7 = smov 121   ;;  %s936_s8 = smov 120  }
  0x61   : > { %s937_s11 = smov 119   ;;  %s938_s21 = smov 118  }
  0x62   : > { %s939_s20 = smov 117   ;;  %s940_s22 = smov 116  }
  0x63   : > { %753 = vset.pattern.permute.xlu1 %v917_v5  ;;  %754 = vset.pattern.permute.xlu0 %v918_v6  ;;  %s941_s24 = smov 115   ;;  %s942_s6 = smov 114  }
  0x64   : > { %331 = vperm.xlu1 %753, %v249_v2   ;;  %347 = vperm.xlu0 %754, %v249_v2   ;;  %s943_s9 = smov 113   ;;  %s636_s29 = sshll.u32 %s1120_s10, 3 }
  0x68   : > { %755 = vset.pattern.permute.xlu1 %v919_v7  ;;  %757 = vset.pattern.permute.xlu0 %v920_v8 }
  0x69   : > { %363 = vperm.xlu1 %755, %v249_v2   ;;  %395 = vperm.xlu0 %757, %v249_v2  }
  0x6d   : > { %756 = vset.pattern.permute.xlu1 %v921_v9  ;;  %760 = vset.pattern.permute.xlu0 %v922_v10 }
  0x6e   : > { %379 = vperm.xlu1 %756, %v249_v2   ;;  %443 = vperm.xlu0 %760, %v249_v2  }
  0x72   : > { %758 = vset.pattern.permute.xlu1 %v923_v11  ;;  %763 = vset.pattern.permute.xlu0 %v924_v12 }
  0x73   : > { %411 = vperm.xlu1 %758, %v249_v2   ;;  %491 = vperm.xlu0 %763, %v249_v2  }
  0x77   : > { %759 = vset.pattern.permute.xlu1 %v925_v13 }
  0x78   : > { %427 = vperm.xlu1 %759, %v249_v2  }
  0x7c   : > { %761 = vset.pattern.permute.xlu1 %v926_v14 }
  0x7d   : > { %459 = vperm.xlu1 %761, %v249_v2  }
  0x81   : > { %762 = vset.pattern.permute.xlu1 %v927_v15 }
  0x82   : > { %475 = vperm.xlu1 %762, %v249_v2  }
  0x86   : > { %764 = vset.pattern.permute.xlu1 %v928_v16 }
  0x87   : > { %254 = vperm.xlu1 %764, %v249_v2  }
  0xd9   : > { %v264_v19 = vpop.permute.xlu0 %263  ;;  %v300_v22 = vpop.permute.xlu1 %299 }
  0xda   : > { %v270_v20 = vmul.f32 %v1135_v17, %v264_v19  ;;  %v271_v21 = vmul.f32 %v1137_v18, %v264_v19  ;;  %v302_v27 = vmul.f32 %v1135_v17, %v300_v22  ;;  %v303_v28 = vmul.f32 %v1137_v18, %v300_v22 }
  0xdc   : > { %276 = vrot.lane.b32.xlu0 %v271_v21, %s929_s18  ;;  %274 = vrot.lane.b32.xlu1 %v270_v20, %s929_s18  ;;  %s641_s18 = sshll.u32 %s901_s15, 7 }
  0xde   : > { %v284_v23 = vpop.permute.xlu0 %283  ;;  %v316_v26 = vpop.permute.xlu1 %315 }
  0xdf   : > { %v286_v24 = vmul.f32 %v1135_v17, %v284_v23  ;;  %v287_v25 = vmul.f32 %v1137_v18, %v284_v23  ;;  %v318_v29 = vmul.f32 %v1135_v17, %v316_v26  ;;  %v319_v30 = vmul.f32 %v1137_v18, %v316_v26 }
  0xe1   : > { %292 = vrot.lane.b32.xlu0 %v287_v25, %s930_s19  ;;  %290 = vrot.lane.b32.xlu1 %v286_v24, %s930_s19  ;;  %s239_s19 = scalar_lea.vmem [#allocation7], %s636_s29 }
  0xe3   : > { %v332_v31 = vpop.permute.xlu1 %331  ;;  %v348_v34 = vpop.permute.xlu0 %347 }
  0xe4   : > { %v334_v32 = vmul.f32 %v1135_v17, %v332_v31  ;;  %v335_v33 = vmul.f32 %v1137_v18, %v332_v31  ;;  %v350_v36 = vmul.f32 %v1135_v17, %v348_v34  ;;  %v351_v37 = vmul.f32 %v1137_v18, %v348_v34 }
  0xe5   : > { %308 = vrot.lane.b32.xlu0 %v303_v28, %s931_s25  ;;  %306 = vrot.lane.b32.xlu1 %v302_v27, %s931_s25  ;;  %s522_s25 = sshll.u32 %s239_s19, 4  ;;  %s1177_s25 = int_to_ptr.vmem [resolvable:$true] %s522_s25 }
  0xe6   : > { %s823_s15 = scalar_lea.vmem %s1177_s25, 128 }
  0xe7   : > { %p824_p6 = scmp.ne.s32.totalorder %s1177_s25, %s823_s15 }
  0xe8   : > { %v364_v35 = vpop.permute.xlu1 %363  ;;  %v396_v43 = vpop.permute.xlu0 %395 }
  0xe9   : > { %324 = vrot.lane.b32.xlu0 %v319_v30, %s932_s26  ;;  %322 = vrot.lane.b32.xlu1 %v318_v29, %s932_s26  ;;  %v366_v38 = vmul.f32 %v1135_v17, %v364_v35  ;;  %v367_v39 = vmul.f32 %v1137_v18, %v364_v35  ;;  %v398_v45 = vmul.f32 %v1135_v17, %v396_v43  ;;  %p825_p8 = pnand %p824_p6, %p1066_p13 }
  0xea   : > { %v399_v46 = vmul.f32 %v1137_v18, %v396_v43 }
  0xeb   : > { %p826_p9 = pneg %p825_p8 }
  0xed   : > { %340 = vrot.lane.b32.xlu0 %v335_v33, %s933_s4  ;;  %338 = vrot.lane.b32.xlu1 %v334_v32, %s933_s4  ;;  %v380_v40 = vpop.permute.xlu1 %379  ;;  %v444_v52 = vpop.permute.xlu0 %443 }
  0xee   : > { %v382_v41 = vmul.f32 %v1135_v17, %v380_v40  ;;  %v383_v42 = vmul.f32 %v1137_v18, %v380_v40  ;;  %v446_v54 = vmul.f32 %v1135_v17, %v444_v52  ;;  %v447_v55 = vmul.f32 %v1137_v18, %v444_v52 }
  0xf1   : > { %356 = vrot.lane.b32.xlu0 %v351_v37, %s934_s30  ;;  %354 = vrot.lane.b32.xlu1 %v350_v36, %s934_s30  ;;  %s1175_s30 = scalar_lea.hbm %s1227_s3, %s641_s18 }
  0xf2   : > { %v412_v44 = vpop.permute.xlu1 %411  ;;  %v492_v61 = vpop.permute.xlu0 %491 }
  0xf3   : > { %v414_v47 = vmul.f32 %v1135_v17, %v412_v44  ;;  %v415_v48 = vmul.f32 %v1137_v18, %v412_v44  ;;  %v494_v62 = vmul.f32 %v1135_v17, %v492_v61  ;;  %v495_v63 = vmul.f32 %v1137_v18, %v492_v61 }
  0xf5   : > { %372 = vrot.lane.b32.xlu0 %v367_v39, %s935_s7  ;;  %370 = vrot.lane.b32.xlu1 %v366_v38, %s935_s7  ;;  %s508_s7 = scalar_lea.sflag [#allocation4], %s1120_s10 }
  0xf7   : > { %v428_v49 = vpop.permute.xlu1 %427 }
  0xf8   : > { %v430_v50 = vmul.f32 %v1135_v17, %v428_v49  ;;  %v431_v51 = vmul.f32 %v1137_v18, %v428_v49 }
  0xf9   : > { %388 = vrot.lane.b32.xlu0 %v383_v42, %s936_s8  ;;  %386 = vrot.lane.b32.xlu1 %v382_v41, %s936_s8  ;;  %s944_s8 = smov [#allocation7]  }
  0xfc   : > { %v460_v53 = vpop.permute.xlu1 %459 }
  0xfd   : > { %404 = vrot.lane.b32.xlu0 %v399_v46, %s937_s11  ;;  %402 = vrot.lane.b32.xlu1 %v398_v45, %s937_s11  ;;  %v462_v56 = vmul.f32 %v1135_v17, %v460_v53  ;;  %v463_v57 = vmul.f32 %v1137_v18, %v460_v53  ;;  %s827_s11 = sshll.u32 %s944_s8, 4  ;;  %s828_s11 = int_to_ptr.vmem [resolvable:$false] %s827_s11 }
  0xfe   : > { %p830_p12 = scmp.lt.s32.totalorder %s1177_s25, %s828_s11 }
 0x101   : > { %420 = vrot.lane.b32.xlu0 %v415_v48, %s938_s21  ;;  %418 = vrot.lane.b32.xlu1 %v414_v47, %s938_s21  ;;  %v476_v58 = vpop.permute.xlu1 %475  ;;  %s829_s21 = scalar_lea.vmem %s828_s11, 256 }
 0x102   : > { %v478_v59 = vmul.f32 %v1135_v17, %v476_v58  ;;  %v479_v60 = vmul.f32 %v1137_v18, %v476_v58  ;;  %p831_p0 = scmp.lt.s32.totalorder %s829_s21, %s823_s15 }
 0x104   : > { %p832_p5 = por %p831_p0, %p830_p12 }
 0x105   : > { %436 = vrot.lane.b32.xlu0 %v431_v51, %s939_s20  ;;  %434 = vrot.lane.b32.xlu1 %v430_v50, %s939_s20 }
 0x106   : > { %v255_v0 = vpop.permute.xlu1 %254  ;;  %p833_p10 = pnand %p832_p5, %p826_p9 }
 0x107   : > { %v261_v16 = vmul.f32 %v1135_v17, %v255_v0 }
 0x109   : > { %452 = vrot.lane.b32.xlu0 %v447_v55, %s940_s22  ;;  %450 = vrot.lane.b32.xlu1 %v446_v54, %s940_s22 }
 0x10d   : > { %468 = vrot.lane.b32.xlu0 %v463_v57, %s941_s24  ;;  %466 = vrot.lane.b32.xlu1 %v462_v56, %s941_s24 }
 0x111   : > { %484 = vrot.lane.b32.xlu0 %v479_v60, %s942_s6  ;;  %482 = vrot.lane.b32.xlu1 %v478_v59, %s942_s6 }
 0x115   : > { %500 = vrot.lane.b32.xlu0 %v495_v63, %s943_s9  ;;  %498 = vrot.lane.b32.xlu1 %v494_v62, %s943_s9 }
 0x14e   : > { %v275_v1 = vpop.permute.xlu1 %274  ;;  %v277_v2 = vpop.permute.xlu0 %276 }
 0x14f   : > { %v279_v15 = vsel %vm278_vm0, %v275_v1, %v277_v2 }
 0x150   : > { %v281_v21 = vadd.f32 %v279_v15, %v261_v16 }
 0x153   : > { %v291_v3 = vpop.permute.xlu1 %290  ;;  %v293_v4 = vpop.permute.xlu0 %292 }
 0x154   : > { %v295_v20 = vsel %vm294_vm1, %v291_v3, %v293_v4 }
 0x155   : > { %v297_v23 = vadd.f32 %v295_v20, %v281_v21 }
 0x157   : > { %v307_v5 = vpop.permute.xlu1 %306  ;;  %v309_v6 = vpop.permute.xlu0 %308 }
 0x158   : > { %v311_v22 = vsel %vm310_vm2, %v307_v5, %v309_v6 }
 0x159   : > { %v313_v27 = vadd.f32 %v311_v22, %v297_v23 }
 0x15b   : > { %v323_v7 = vpop.permute.xlu1 %322  ;;  %v325_v8 = vpop.permute.xlu0 %324 }
 0x15c   : > { %v327_v26 = vsel %vm326_vm3, %v323_v7, %v325_v8 }
 0x15d   : > { %v329_v29 = vadd.f32 %v327_v26, %v313_v27 }
 0x15f   : > { %v339_v9 = vpop.permute.xlu1 %338  ;;  %v341_v10 = vpop.permute.xlu0 %340 }
 0x160   : > { %v343_v28 = vsel %vm342_vm4, %v339_v9, %v341_v10 }
 0x161   : > { %v345_v32 = vadd.f32 %v343_v28, %v329_v29 }
 0x163   : > { %v355_v11 = vpop.permute.xlu1 %354  ;;  %v357_v12 = vpop.permute.xlu0 %356 }
 0x164   : > { %v359_v17 = vsel %vm358_vm5, %v355_v11, %v357_v12 }
 0x165   : > { %v361_v34 = vadd.f32 %v359_v17, %v345_v32 }
 0x167   : > { %v371_v13 = vpop.permute.xlu1 %370  ;;  %v373_v14 = vpop.permute.xlu0 %372 }
 0x168   : > { %v375_v33 = vsel %vm374_vm6, %v371_v13, %v373_v14 }
 0x169   : > { %v377_v38 = vadd.f32 %v375_v33, %v361_v34 }
 0x16b   : > { %v387_v18 = vpop.permute.xlu1 %386  ;;  %v389_v19 = vpop.permute.xlu0 %388 }
 0x16c   : > { %v391_v37 = vsel %vm390_vm7, %v387_v18, %v389_v19 }
 0x16d   : > { %v393_v40 = vadd.f32 %v391_v37, %v377_v38 }
 0x16f   : > { %v403_v24 = vpop.permute.xlu1 %402  ;;  %v405_v25 = vpop.permute.xlu0 %404 }
 0x170   : > { %v407_v39 = vsel %vm406_vm8, %v403_v24, %v405_v25 }
 0x171   : > { %v409_v44 = vadd.f32 %v407_v39, %v393_v40 }
 0x173   : > { %v419_v30 = vpop.permute.xlu1 %418  ;;  %v421_v31 = vpop.permute.xlu0 %420 }
 0x174   : > { %v423_v43 = vsel %vm422_vm9, %v419_v30, %v421_v31 }
 0x175   : > { %v425_v46 = vadd.f32 %v423_v43, %v409_v44 }
 0x177   : > { %v435_v35 = vpop.permute.xlu1 %434  ;;  %v437_v36 = vpop.permute.xlu0 %436 }
 0x178   : > { %v439_v45 = vsel %vm438_vm10, %v435_v35, %v437_v36 }
 0x179   : > { %v441_v50 = vadd.f32 %v439_v45, %v425_v46 }
 0x17b   : > { %v451_v41 = vpop.permute.xlu1 %450  ;;  %v453_v42 = vpop.permute.xlu0 %452 }
 0x17c   : > { %v455_v49 = vsel %vm454_vm11, %v451_v41, %v453_v42 }
 0x17d   : > { %v457_v52 = vadd.f32 %v455_v49, %v441_v50 }
 0x17f   : > { %v467_v47 = vpop.permute.xlu1 %466  ;;  %v469_v48 = vpop.permute.xlu0 %468 }
 0x180   : > { %v471_v51 = vsel %vm470_vm12, %v467_v47, %v469_v48 }
 0x181   : > { %v473_v56 = vadd.f32 %v471_v51, %v457_v52 }
 0x183   : > { %v483_v53 = vpop.permute.xlu1 %482  ;;  %v485_v54 = vpop.permute.xlu0 %484 }
 0x184   : > { %v487_v55 = vsel %vm486_vm13, %v483_v53, %v485_v54 }
 0x185   : > { %v489_v57 = vadd.f32 %v487_v55, %v473_v56 }
 0x187   : > { %v499_v58 = vpop.permute.xlu1 %498  ;;  %v501_v59 = vpop.permute.xlu0 %500 }
 0x188   : > { %v503_v60 = vsel %vm502_vm14, %v499_v58, %v501_v59 }
 0x189   : > { %v505_v61 = vadd.f32 %v503_v60, %v489_v57 }
 0x18b   : > { %506 = vst [vmem:[%s239_s19] sm:$0xff] %v505_v61 }
 0x18c   : > { %836 = shalt.err (!%p833_p10)
}
 0x18d   : > { %s837_s10 = scalar_lea.hbm %s1175_s30, 128  ;;  %s841_s24 = scalar_lea.hbm %s1227_s3, 256 }
 0x18e   : > { %p838_p1 = scmp.ne.s32.totalorder %s1175_s30, %s837_s10  ;;  %p842_p3 = scmp.lt.u32.totalorder %s1175_s30, %s1227_s3 }
 0x18f   : > { %p843_p4 = scmp.lt.u32.totalorder %s841_s24, %s837_s10  ;;  %p845_p6 = scmp.lt.u32.totalorder %s837_s10, %s1175_s30 }
 0x190   : > { %p839_p2 = pnand %p838_p1, %p1066_p13 }
 0x191   : > { %p844_p11 = por %p843_p4, %p842_p3 }
 0x192   : > { %p840_p7 = pneg %p839_p2 }
 0x193   : > { %p846_p8 = por %p845_p6, %p844_p11 }
 0x195   : > { %p847_p9 = pnand %p846_p8, %p840_p7 }
 0x197   : > { %850 = shalt.err (!%p847_p9)
}
 0x198   : > { %651 = dma.vmem_to_hbm [thread:$0]  (%p1066_p13), %s1177_s25, 128, %s1175_s30, %s508_s7  }
 0x199 PF: > { %s534_s29 = sand.u32 1, %s889_s12   ;;  %p1246_p12 = scmp.ne.s32.totalorder %s1235_s23, 0 }
 0x19a   : > { %p1247_p0 = scmp.ge.s32.totalorder %s909_s17, 2  ;;  %s535_s18 = scalar_lea.sflag [#allocation4], %s534_s29 }
 0x19c   : > { %p662_p5 = pnand %p1247_p0, %p1246_p12 }
 0x19e   : > { %884 = dma.done.wait (!%p662_p5), %s535_s18, 128  }
 0x19f   : > { %886 = vsyncadd (!%p662_p5), %s535_s18, 4294967168  ;;  %s20_s17 = sadd.s32 1, %s909_s17   ;;  %s1248_s12 = smov %s893_s13 }
 0x1a0   : > { %p17_p10 = scmp.ge.s32.totalorder %s20_s17, 4   ;;  %s1249_s13 = smov %s897_s14 }
 0x1a1   : > { %s1250_s14 = smov %s1074_s5  ;;  %s1251_s15 = smov %s905_s16 }
 0x1a2   : > { %s1252_s16 = smov %s1254_s28  ;;  %19 = sbr.rel (!%p17_p10) target bundleno = 7 (0x7), region = 85 }
 0x1a9   :  { %540 = vsyncpa [#allocation3], 1 }
 0x1aa   :  { %542 = vsyncpa [#allocation3 + $0x1], 1 }
 0x1ab   :  { %543 = vsyncpa [#allocation6], 1 }
 0x1ac   :  { %545 = vsyncpa [#allocation6 + $0x1], 1 }
 0x1ad   :  { %546 = vsyncpa [#allocation4], 1 }
 0x1ae   :  { %548 = vsyncpa [#allocation4 + $0x1], 1 }

</bundles_post_ra>
